<compile_context>
chip_gen: v7x
topology: tpu7x:2x2x1
jax: 0.10.0
libtpu: 0.0.40
codegen_flags: <defaults>
</compile_context>

<pallas_src>
import functools

import jax
import jax.numpy as jnp
from jax.experimental import pallas as pl
from jax.experimental.pallas import tpu as pltpu


# Matmul operand dtype for the bulk (encoder/decoder) MLPs.  Keep f32 to match
# the PyTorch module's numerics; set to jnp.bfloat16 on v6e/v7x for ~2x MXU
# throughput (accumulation stays f32 via preferred_element_type).
_MXU_DTYPE = jnp.float32


def _elu(x):
    # overflow-safe: never evaluates exp() on the positive branch
    return jnp.where(x > 0, x, jnp.exp(jnp.minimum(x, 0.0)) - 1.0)


# -----------------------------------------------------------------------------
# Kernel 1: fused two-layer MLP  y = ELU(x @ W1 + b1) @ W2 + b2, M-tiled.
# Used for the (merged) decoder pass.
# -----------------------------------------------------------------------------
def mlp2_kernel(x_ref, w1_ref, b1_ref, w2_ref, b2_ref, o_ref):
    x = x_ref[...].astype(_MXU_DTYPE)
    h = jnp.dot(x, w1_ref[...].astype(_MXU_DTYPE),
                preferred_element_type=jnp.float32) + b1_ref[...]
    h = _elu(h)
    y = jnp.dot(h.astype(_MXU_DTYPE), w2_ref[...].astype(_MXU_DTYPE),
                preferred_element_type=jnp.float32) + b2_ref[...]
    o_ref[...] = y.astype(o_ref.dtype)


def mlp2(x2d, w1, b1, w2, b2, tile_m=512):
    M, Din = x2d.shape
    Dh = w1.shape[1]
    Dout = w2.shape[1]
    x2d = x2d.astype(jnp.float32)
    b1 = b1.reshape(1, Dh).astype(jnp.float32)
    b2 = b2.reshape(1, Dout).astype(jnp.float32)

    if M <= tile_m:
        tm, Mp = M, M
    else:
        tm = tile_m                                   # multiple of 8
        Mp = ((M + tm - 1) // tm) * tm
        if Mp != M:
            x2d = jnp.pad(x2d, ((0, Mp - M), (0, 0)))

    out = pl.pallas_call(
        mlp2_kernel,
        out_shape=jax.ShapeDtypeStruct((Mp, Dout), jnp.float32),
        grid=(Mp // tm,),
        in_specs=[
            pl.BlockSpec((tm, Din), lambda i: (i, 0)),
            pl.BlockSpec((Din, Dh), lambda i: (0, 0)),   # weights: constant index
            pl.BlockSpec((1, Dh), lambda i: (0, 0)),
            pl.BlockSpec((Dh, Dout), lambda i: (0, 0)),
            pl.BlockSpec((1, Dout), lambda i: (0, 0)),
        ],
        out_specs=pl.BlockSpec((tm, Dout), lambda i: (i, 0)),
        compiler_params=pltpu.CompilerParams(dimension_semantics=("parallel",)),
    )(x2d, w1.astype(jnp.float32), b1, w2.astype(jnp.float32), b2)
    return out[:M] if Mp != M else out


# -----------------------------------------------------------------------------
# Kernel 2: fused x-encoder + z-encoder (+ folded zc head).
#   layer 1: one matmul with block-diagonal W1  -> h = ELU([x|z] @ W1_blk + b1)
#   layer 2: two dots (no zero-padding waste):
#       Xh = h[:, :H] @ xe_w2 + xe_b2                       (width H)
#       [Zh | Zh@wcz] = h[:, H:] @ [ze_w2 | ze_w2@wcz] + .. (width 2H)
#   Output layout per row: [ Xh | Zh | Zh@wcz ]  (width 3H).
# -----------------------------------------------------------------------------
def encoder_kernel(x_ref, w1_ref, b1_ref, w2x_ref, b2x_ref, w2z_ref, b2z_ref,
                   o_ref):
    H = w2x_ref.shape[0]
    x = x_ref[...].astype(_MXU_DTYPE)
    h = jnp.dot(x, w1_ref[...].astype(_MXU_DTYPE),
                preferred_element_type=jnp.float32) + b1_ref[...]
    h = _elu(h)
    hx = h[:, :H].astype(_MXU_DTYPE)
    hz = h[:, H:].astype(_MXU_DTYPE)
    yx = jnp.dot(hx, w2x_ref[...].astype(_MXU_DTYPE),
                 preferred_element_type=jnp.float32) + b2x_ref[...]
    yz = jnp.dot(hz, w2z_ref[...].astype(_MXU_DTYPE),
                 preferred_element_type=jnp.float32) + b2z_ref[...]
    o_ref[...] = jnp.concatenate([yx, yz], axis=1).astype(o_ref.dtype)


def fused_encoders(xz_rows, w1_blk, b1_blk, w2x, b2x, w2z, b2z, tile_m=512):
    M, Din = xz_rows.shape
    H2 = w1_blk.shape[1]          # 2H
    H = w2x.shape[1]
    Dz = w2z.shape[1]             # 2H (Zh and Zh@wcz)
    Dout = H + Dz
    xz_rows = xz_rows.astype(jnp.float32)
    b1_blk = b1_blk.reshape(1, H2).astype(jnp.float32)
    b2x = b2x.reshape(1, H).astype(jnp.float32)
    b2z = b2z.reshape(1, Dz).astype(jnp.float32)

    if M <= tile_m:
        tm, Mp = M, M
    else:
        tm = tile_m
        Mp = ((M + tm - 1) // tm) * tm
        if Mp != M:
            xz_rows = jnp.pad(xz_rows, ((0, Mp - M), (0, 0)))

    out = pl.pallas_call(
        encoder_kernel,
        out_shape=jax.ShapeDtypeStruct((Mp, Dout), jnp.float32),
        grid=(Mp // tm,),
        in_specs=[
            pl.BlockSpec((tm, Din), lambda i: (i, 0)),
            pl.BlockSpec((Din, H2), lambda i: (0, 0)),
            pl.BlockSpec((1, H2), lambda i: (0, 0)),
            pl.BlockSpec((H, H), lambda i: (0, 0)),
            pl.BlockSpec((1, H), lambda i: (0, 0)),
            pl.BlockSpec((H, Dz), lambda i: (0, 0)),
            pl.BlockSpec((1, Dz), lambda i: (0, 0)),
        ],
        out_specs=pl.BlockSpec((tm, Dout), lambda i: (i, 0)),
        compiler_params=pltpu.CompilerParams(dimension_semantics=("parallel",)),
    )(xz_rows, w1_blk.astype(jnp.float32), b1_blk,
      w2x.astype(jnp.float32), b2x, w2z.astype(jnp.float32), b2z)
    return out[:M] if Mp != M else out


# -----------------------------------------------------------------------------
# Kernel 3: explicit-Euler ODE solve with the DE_Func MLP fused in.
#   pre-act = all_initial @ (W1a - W1b) + xt @ wcx + zt @ wcz + b1
#   with W1a = W1[:2H], W1b = W1[2H:4H], W1c = W1[4H:6H], wc = W1b + W1c, and
#   xtzt = cat(xt, zt) (matches the PyTorch DE_Func cat order).
#   zc[k] = Zh[k] @ wcz is precomputed by the fused encoder (hoisted).
#   Grid walks T-chunks; state / base / z-carry live in VMEM scratch.
# -----------------------------------------------------------------------------
def euler_kernel(dt_ref, zc_ref, xh0_ref, ai_ref, wa_ref, wcx_ref,
                 b1_ref, w2_ref, b2_ref, sol_ref, state, base, zprev):
    c = pl.program_id(0)
    Tc = sol_ref.shape[0]

    def step(zt, dt, j):
        xt = state[...]                                           # (B, H)
        h = base[...] + jnp.dot(xt, wcx_ref[...],
                                preferred_element_type=jnp.float32) + zt
        h = _elu(h)
        dx = jnp.dot(h, w2_ref[...],
                     preferred_element_type=jnp.float32) + b2_ref[...]
        new = xt + dt * dx                                        # dt: (B, 1)
        state[...] = new
        sol_ref[j] = new

    @pl.when(c == 0)
    def _():
        # constant layer-1 contribution of all_initial (computed once)
        base[...] = jnp.dot(ai_ref[...], wa_ref[...],
                            preferred_element_type=jnp.float32) + b1_ref[...]
        state[...] = xh0_ref[...]                 # initial state = Xh[0]
        zprev[...] = jnp.zeros_like(zprev)        # never read for chunk 0
        sol_ref[0] = xh0_ref[...]                 # solution[0] = initial state

    @pl.when(c != 0)
    def _():
        # first step of a later chunk uses the z contribution carried from the
        # previous chunk.
        # TODO(synk): z is sampled at the left endpoint (Zh[k-1]); the exact
        # Euler class of the reference is unavailable to confirm the rule.
        step(zprev[...], dt_ref[0], 0)

    @pl.loop(1, Tc)
    def _(j):
        step(zc_ref[j - 1], dt_ref[j], j)

    zprev[...] = zc_ref[Tc - 1]                  # carry across chunk boundary


def euler_integrate(dt_tm, zc_tm, xh0, all_init, wa, wcx, b1, w2, b2,
                    tile_t=256):
    T, B, H = zc_tm.shape
    b1 = b1.reshape(1, H).astype(jnp.float32)
    b2 = b2.reshape(1, H).astype(jnp.float32)

    if T <= tile_t:
        Tc, Tp = T, T
    else:
        Tc = tile_t
        Tp = ((T + Tc - 1) // Tc) * Tc
        if Tp != T:                               # pad with dt=0 -> no-op steps
            pad = ((0, Tp - T), (0, 0), (0, 0))
            dt_tm = jnp.pad(dt_tm, pad)
            zc_tm = jnp.pad(zc_tm, pad)

    sol = pl.pallas_call(
        euler_kernel,
        out_shape=jax.ShapeDtypeStruct((Tp, B, H), jnp.float32),
        grid=(Tp // Tc,),
        in_specs=[
            pl.BlockSpec((Tc, B, 1), lambda c: (c, 0, 0)),   # dt chunk
            pl.BlockSpec((Tc, B, H), lambda c: (c, 0, 0)),   # zc chunk
            pl.BlockSpec((B, H), lambda c: (0, 0)),          # Xh[0]
            pl.BlockSpec((B, 2 * H), lambda c: (0, 0)),      # all_initial
            pl.BlockSpec((2 * H, H), lambda c: (0, 0)),      # wa
            pl.BlockSpec((H, H), lambda c: (0, 0)),          # wcx
            pl.BlockSpec((1, H), lambda c: (0, 0)),          # de_b1
            pl.BlockSpec((H, H), lambda c: (0, 0)),          # de_w2
            pl.BlockSpec((1, H), lambda c: (0, 0)),          # de_b2
        ],
        out_specs=pl.BlockSpec((Tc, B, H), lambda c: (c, 0, 0)),
        scratch_shapes=[
            pltpu.VMEM((B, H), jnp.float32),   # running state
            pltpu.VMEM((B, H), jnp.float32),   # constant all_initial term
            pltpu.VMEM((B, H), jnp.float32),   # z-contribution carry
        ],
        compiler_params=pltpu.CompilerParams(dimension_semantics=("arbitrary",)),
    )(dt_tm.astype(jnp.float32), zc_tm.astype(jnp.float32),
      xh0.astype(jnp.float32), all_init.astype(jnp.float32),
      wa.astype(jnp.float32), wcx.astype(jnp.float32), b1,
      w2.astype(jnp.float32), b2)
    return sol[:T] if Tp != T else sol


# -----------------------------------------------------------------------------
# Parameter init (deterministic, PyTorch-nn.Linear-style uniform) and forward
# -----------------------------------------------------------------------------
def init_linear(key, din, dout):
    k1, k2 = jax.random.split(key)
    lim = 1.0 / float(din) ** 0.5
    w = jax.random.uniform(k1, (din, dout), jnp.float32, -lim, lim)
    b = jax.random.uniform(k2, (dout,), jnp.float32, -lim, lim)
    return w, b


def init_params(key, x_dim, z_dim, hidden_dim):
    ks = jax.random.split(key, 8)
    p = {}
    p["xe_w1"], p["xe_b1"] = init_linear(ks[0], x_dim, hidden_dim)
    p["xe_w2"], p["xe_b2"] = init_linear(ks[1], hidden_dim, hidden_dim)
    p["xd_w1"], p["xd_b1"] = init_linear(ks[2], hidden_dim, hidden_dim)
    p["xd_w2"], p["xd_b2"] = init_linear(ks[3], hidden_dim, x_dim)
    p["ze_w1"], p["ze_b1"] = init_linear(ks[4], z_dim, hidden_dim)
    p["ze_w2"], p["ze_b2"] = init_linear(ks[5], hidden_dim, hidden_dim)
    p["de_w1"], p["de_b1"] = init_linear(ks[6], 6 * hidden_dim, hidden_dim)
    p["de_w2"], p["de_b2"] = init_linear(ks[7], hidden_dim, hidden_dim)
    return p


def ode_model_forward(params, t, x, z, event_t, z_jump):
    """t:(B,T,1)  x:(B,T,x_dim)  z:(B,T,z_dim)  z_jump:(B,J,z_dim)."""
    B, T, x_dim = x.shape
    z_dim = z.shape[-1]
    H = params["xe_w2"].shape[1]

    # --- DE_Func layer-1 weight folding (done once, on weights) --------------
    w1 = params["de_w1"]                           # (6H, H)
    wa = w1[: 2 * H] - w1[2 * H: 4 * H]            # multiplies all_initial
    wc = w1[2 * H: 4 * H] + w1[4 * H: 6 * H]       # multiplies xtzt = cat(xt, zt)
    wcx, wcz = wc[:H], wc[H:]

    # --- fused x/z encoder launch (time-major rows; cheap transposes since the
    #     last dims are x_dim/z_dim-wide only) ---------------------------------
    x_tm = x.transpose(1, 0, 2).reshape(T * B, x_dim)
    z_tm = z.transpose(1, 0, 2).reshape(T * B, z_dim)
    xz_rows = jnp.concatenate([x_tm, z_tm], axis=-1).astype(jnp.float32)

    w1_blk = jnp.zeros((x_dim + z_dim, 2 * H), jnp.float32)
    w1_blk = w1_blk.at[:x_dim, :H].set(params["xe_w1"])
    w1_blk = w1_blk.at[x_dim:, H:].set(params["ze_w1"])
    b1_blk = jnp.concatenate([params["xe_b1"], params["ze_b1"]], axis=0)
    # z head also emits Zh @ wcz (hoists the z matmul out of the Euler loop)
    ze_w2c = jnp.concatenate([params["ze_w2"], params["ze_w2"] @ wcz], axis=1)
    ze_b2c = jnp.concatenate([params["ze_b2"], params["ze_b2"] @ wcz], axis=0)

    enc = fused_encoders(xz_rows, w1_blk, b1_blk,
                         params["xe_w2"], params["xe_b2"],
                         ze_w2c, ze_b2c)                       # (T*B, 3H)
    Xh_tm = enc[:, :H]                                         # time-major Xh
    Xh0 = enc[:B, :H]                                          # Xh at t=0
    Zh0 = enc[:B, H:2 * H]                                     # Zh at t=0
    zc_tm = enc[:, 2 * H:].reshape(T, B, H)                    # Zh @ wcz

    all_init = jnp.concatenate([Xh0, Zh0], axis=-1)            # (B, 2H)

    # TODO(synk): ODE_Event.set_event / event_fn / jump_change_fn sources are
    # not available; event_t and z_jump are not folded into the solve (and the
    # otherwise-unused Zh_jump encoding is skipped entirely).
    del event_t, z_jump

    # dt precomputed once (dt[0] = 0; solution[0] is the initial state)
    t_tm = t.transpose(1, 0, 2).astype(jnp.float32)            # (T, B, 1), tiny
    dt_tm = jnp.concatenate(
        [jnp.zeros((1, B, 1), jnp.float32), t_tm[1:] - t_tm[:-1]], axis=0)

    Xh_solution = euler_integrate(dt_tm, zc_tm, Xh0, all_init, wa, wcx,
                                  params["de_b1"], params["de_w2"],
                                  params["de_b2"])             # (T, B, H)

    # --- single merged decoder launch for both sequences ----------------------
    dec = mlp2(jnp.concatenate([Xh_solution.reshape(T * B, H), Xh_tm], axis=0),
               params["xd_w1"], params["xd_b1"],
               params["xd_w2"], params["xd_b2"])               # (2*T*B, x_dim)
    out_solution = dec[:T * B].reshape(T, B, x_dim).transpose(1, 0, 2)  # (B,T,x)
    x_re = dec[T * B:].reshape(T, B, x_dim).transpose(1, 0, 2)          # (B,T,x)
    return out_solution, x_re


# -----------------------------------------------------------------------------
if __name__ == "__main__":
    B, T, x_dim, z_dim, hidden_dim, J = 2, 8, 4, 3, 32, 2

    key = jax.random.PRNGKey(0)
    kp, kx, kz, kj = jax.random.split(key, 4)

    params = init_params(kp, x_dim, z_dim, hidden_dim)

    # strictly increasing time grid per batch element
    t = jnp.broadcast_to(
        jnp.linspace(0.0, 1.0, T, dtype=jnp.float32)[None, :, None], (B, T, 1))
    x = jax.random.normal(kx, (B, T, x_dim), jnp.float32)
    z = jax.random.normal(kz, (B, T, z_dim), jnp.float32)
    event_t = jnp.array([[0.25, 0.75], [0.3, 0.8]], dtype=jnp.float32)  # (B, J)
    z_jump = jax.random.normal(kj, (B, J, z_dim), jnp.float32)

    fwd = jax.jit(functools.partial(ode_model_forward, params))
    out_solution, x_re = fwd(t, x, z, event_t, z_jump)
    jax.block_until_ready((out_solution, x_re))

    assert out_solution.shape == (B, T, x_dim)
    assert x_re.shape == (B, T, x_dim)
    assert bool(jnp.all(jnp.isfinite(out_solution))) and bool(jnp.all(jnp.isfinite(x_re)))
    print("KERNEL_OK")
</pallas_src>

<mosaic_0001>
module attributes {stable_mosaic.version = 11 : i64} {
  func.func @mlp2_kernel(%arg0: i32, %arg1: memref<32x32xf32, #tpu.memory_space<vmem>>, %arg2: memref<32x32xf32, #tpu.memory_space<vmem>>, %arg3: memref<1x32xf32, #tpu.memory_space<vmem>>, %arg4: memref<32x4xf32, #tpu.memory_space<vmem>>, %arg5: memref<1x4xf32, #tpu.memory_space<vmem>>, %arg6: memref<32x4xf32, #tpu.memory_space<vmem>>) attributes {dimension_semantics = [#tpu.dimension_semantics<parallel>], iteration_bounds = array<i64: 1>, scalar_prefetch = 0 : i64, scratch_operands = 0 : i64, tpu.core_type = #tpu.core_type<tc>, window_params = [{transform_indices = @transform_0, window_bounds = array<i64: 32, 32>}, {pipeline_mode = #tpu.pipeline_mode<synchronous>, transform_indices = @transform_1, window_bounds = array<i64: 32, 32>}, {pipeline_mode = #tpu.pipeline_mode<synchronous>, transform_indices = @transform_2, window_bounds = array<i64: 1, 32>}, {pipeline_mode = #tpu.pipeline_mode<synchronous>, transform_indices = @transform_3, window_bounds = array<i64: 32, 4>}, {pipeline_mode = #tpu.pipeline_mode<synchronous>, transform_indices = @transform_4, window_bounds = array<i64: 1, 4>}, {transform_indices = @transform_5, window_bounds = array<i64: 32, 4>}]} {
    %c0 = arith.constant 0 : index
    %c0_0 = arith.constant 0 : index
    %0 = vector.load %arg1[%c0, %c0_0] : memref<32x32xf32, #tpu.memory_space<vmem>>, vector<32x32xf32>
    %c0_1 = arith.constant 0 : index
    %c0_2 = arith.constant 0 : index
    %1 = vector.load %arg2[%c0_1, %c0_2] : memref<32x32xf32, #tpu.memory_space<vmem>>, vector<32x32xf32>
    %cst = arith.constant dense<0.000000e+00> : vector<32x32xf32>
    %2 = tpu.matmul %0, %1, %cst {dimension_numbers = #tpu.dot_dimension_numbers<[1], [0], [0], [1], [0, 0, 1, 1], [], []>} : vector<32x32xf32>, vector<32x32xf32>, vector<32x32xf32> -> vector<32x32xf32>
    %c0_3 = arith.constant 0 : index
    %c0_4 = arith.constant 0 : index
    %3 = vector.load %arg3[%c0_3, %c0_4] : memref<1x32xf32, #tpu.memory_space<vmem>>, vector<1x32xf32>
    %4 = vector.broadcast %3 : vector<1x32xf32> to vector<32x32xf32>
    %5 = arith.addf %2, %4 : vector<32x32xf32>
    %cst_5 = arith.constant 0.000000e+00 : f32
    %6 = vector.broadcast %cst_5 : f32 to vector<32x32xf32>
    %7 = arith.cmpf ogt, %5, %6 : vector<32x32xf32>
    %cst_6 = arith.constant 0.000000e+00 : f32
    %8 = vector.broadcast %cst_6 : f32 to vector<32x32xf32>
    %9 = arith.minimumf %5, %8 : vector<32x32xf32>
    %10 = math.exp %9 : vector<32x32xf32>
    %cst_7 = arith.constant 1.000000e+00 : f32
    %11 = vector.broadcast %cst_7 : f32 to vector<32x32xf32>
    %12 = arith.subf %10, %11 : vector<32x32xf32>
    %13 = arith.select %7, %5, %12 : vector<32x32xi1>, vector<32x32xf32>
    %c0_8 = arith.constant 0 : index
    %c0_9 = arith.constant 0 : index
    %14 = vector.load %arg4[%c0_8, %c0_9] : memref<32x4xf32, #tpu.memory_space<vmem>>, vector<32x4xf32>
    %cst_10 = arith.constant dense<0.000000e+00> : vector<32x4xf32>
    %15 = tpu.matmul %13, %14, %cst_10 {dimension_numbers = #tpu.dot_dimension_numbers<[1], [0], [0], [1], [0, 0, 1, 1], [], []>} : vector<32x32xf32>, vector<32x4xf32>, vector<32x4xf32> -> vector<32x4xf32>
    %c0_11 = arith.constant 0 : index
    %c0_12 = arith.constant 0 : index
    %16 = vector.load %arg5[%c0_11, %c0_12] : memref<1x4xf32, #tpu.memory_space<vmem>>, vector<1x4xf32>
    %17 = vector.broadcast %16 : vector<1x4xf32> to vector<32x4xf32>
    %18 = arith.addf %15, %17 : vector<32x4xf32>
    %c0_13 = arith.constant 0 : index
    %c0_14 = arith.constant 0 : index
    %19 = vector.load %arg6[%c0_13, %c0_14] : memref<32x4xf32, #tpu.memory_space<vmem>>, vector<32x4xf32>
    tpu.vector_store %arg6[%c0_13, %c0_14], %18 {strides = array<i32>} : memref<32x4xf32, #tpu.memory_space<vmem>>, vector<32x4xf32>,
    return
  }
  func.func @transform_0(%arg0: i32) -> (i32, i32) {
    %c0_i32 = arith.constant 0 : i32
    %c0_i32_0 = arith.constant 0 : i32
    return %arg0, %c0_i32 : i32, i32
  }
  func.func @transform_1(%arg0: i32) -> (i32, i32) {
    %c0_i32 = arith.constant 0 : i32
    %c0_i32_0 = arith.constant 0 : i32
    %c0_i32_1 = arith.constant 0 : i32
    return %c0_i32, %c0_i32_0 : i32, i32
  }
  func.func @transform_2(%arg0: i32) -> (i32, i32) {
    %c0_i32 = arith.constant 0 : i32
    %c0_i32_0 = arith.constant 0 : i32
    %c0_i32_1 = arith.constant 0 : i32
    return %c0_i32, %c0_i32_0 : i32, i32
  }
  func.func @transform_3(%arg0: i32) -> (i32, i32) {
    %c0_i32 = arith.constant 0 : i32
    %c0_i32_0 = arith.constant 0 : i32
    %c0_i32_1 = arith.constant 0 : i32
    return %c0_i32, %c0_i32_0 : i32, i32
  }
  func.func @transform_4(%arg0: i32) -> (i32, i32) {
    %c0_i32 = arith.constant 0 : i32
    %c0_i32_0 = arith.constant 0 : i32
    %c0_i32_1 = arith.constant 0 : i32
    return %c0_i32, %c0_i32_0 : i32, i32
  }
  func.func @transform_5(%arg0: i32) -> (i32, i32) {
    %c0_i32 = arith.constant 0 : i32
    %c0_i32_0 = arith.constant 0 : i32
    return %arg0, %c0_i32 : i32, i32
  }
}

module attributes {stable_mosaic.version = 11 : i64} {
  func.func @encoder_kernel(%arg0: i32, %arg1: memref<16x7xf32, #tpu.memory_space<vmem>>, %arg2: memref<7x64xf32, #tpu.memory_space<vmem>>, %arg3: memref<1x64xf32, #tpu.memory_space<vmem>>, %arg4: memref<32x32xf32, #tpu.memory_space<vmem>>, %arg5: memref<1x32xf32, #tpu.memory_space<vmem>>, %arg6: memref<32x64xf32, #tpu.memory_space<vmem>>, %arg7: memref<1x64xf32, #tpu.memory_space<vmem>>, %arg8: memref<16x96xf32, #tpu.memory_space<vmem>>) attributes {dimension_semantics = [#tpu.dimension_semantics<parallel>], iteration_bounds = array<i64: 1>, scalar_prefetch = 0 : i64, scratch_operands = 0 : i64, tpu.core_type = #tpu.core_type<tc>, window_params = [{transform_indices = @transform_0, window_bounds = array<i64: 16, 7>}, {pipeline_mode = #tpu.pipeline_mode<synchronous>, transform_indices = @transform_1, window_bounds = array<i64: 7, 64>}, {pipeline_mode = #tpu.pipeline_mode<synchronous>, transform_indices = @transform_2, window_bounds = array<i64: 1, 64>}, {pipeline_mode = #tpu.pipeline_mode<synchronous>, transform_indices = @transform_3, window_bounds = array<i64: 32, 32>}, {pipeline_mode = #tpu.pipeline_mode<synchronous>, transform_indices = @transform_4, window_bounds = array<i64: 1, 32>}, {pipeline_mode = #tpu.pipeline_mode<synchronous>, transform_indices = @transform_5, window_bounds = array<i64: 32, 64>}, {pipeline_mode = #tpu.pipeline_mode<synchronous>, transform_indices = @transform_6, window_bounds = array<i64: 1, 64>}, {transform_indices = @transform_7, window_bounds = array<i64: 16, 96>}]} {
    %c0 = arith.constant 0 : index
    %c0_0 = arith.constant 0 : index
    %0 = vector.load %arg1[%c0, %c0_0] : memref<16x7xf32, #tpu.memory_space<vmem>>, vector<16x7xf32>
    %c0_1 = arith.constant 0 : index
    %c0_2 = arith.constant 0 : index
    %1 = vector.load %arg2[%c0_1, %c0_2] : memref<7x64xf32, #tpu.memory_space<vmem>>, vector<7x64xf32>
    %cst = arith.constant dense<0.000000e+00> : vector<16x64xf32>
    %2 = tpu.matmul %0, %1, %cst {dimension_numbers = #tpu.dot_dimension_numbers<[1], [0], [0], [1], [0, 0, 1, 1], [], []>} : vector<16x7xf32>, vector<7x64xf32>, vector<16x64xf32> -> vector<16x64xf32>
    %c0_3 = arith.constant 0 : index
    %c0_4 = arith.constant 0 : index
    %3 = vector.load %arg3[%c0_3, %c0_4] : memref<1x64xf32, #tpu.memory_space<vmem>>, vector<1x64xf32>
    %4 = vector.broadcast %3 : vector<1x64xf32> to vector<16x64xf32>
    %5 = arith.addf %2, %4 : vector<16x64xf32>
    %cst_5 = arith.constant 0.000000e+00 : f32
    %6 = vector.broadcast %cst_5 : f32 to vector<16x64xf32>
    %7 = arith.cmpf ogt, %5, %6 : vector<16x64xf32>
    %cst_6 = arith.constant 0.000000e+00 : f32
    %8 = vector.broadcast %cst_6 : f32 to vector<16x64xf32>
    %9 = arith.minimumf %5, %8 : vector<16x64xf32>
    %10 = math.exp %9 : vector<16x64xf32>
    %cst_7 = arith.constant 1.000000e+00 : f32
    %11 = vector.broadcast %cst_7 : f32 to vector<16x64xf32>
    %12 = arith.subf %10, %11 : vector<16x64xf32>
    %13 = arith.select %7, %5, %12 : vector<16x64xi1>, vector<16x64xf32>
    %14 = vector.extract_strided_slice %13 {offsets = [0, 0], sizes = [16, 32], strides = [1, 1]} : vector<16x64xf32> to vector<16x32xf32>
    %15 = vector.extract_strided_slice %13 {offsets = [0, 32], sizes = [16, 32], strides = [1, 1]} : vector<16x64xf32> to vector<16x32xf32>
    %c0_8 = arith.constant 0 : index
    %c0_9 = arith.constant 0 : index
    %16 = vector.load %arg4[%c0_8, %c0_9] : memref<32x32xf32, #tpu.memory_space<vmem>>, vector<32x32xf32>
    %cst_10 = arith.constant dense<0.000000e+00> : vector<16x32xf32>
    %17 = tpu.matmul %14, %16, %cst_10 {dimension_numbers = #tpu.dot_dimension_numbers<[1], [0], [0], [1], [0, 0, 1, 1], [], []>} : vector<16x32xf32>, vector<32x32xf32>, vector<16x32xf32> -> vector<16x32xf32>
    %c0_11 = arith.constant 0 : index
    %c0_12 = arith.constant 0 : index
    %18 = vector.load %arg5[%c0_11, %c0_12] : memref<1x32xf32, #tpu.memory_space<vmem>>, vector<1x32xf32>
    %19 = vector.broadcast %18 : vector<1x32xf32> to vector<16x32xf32>
    %20 = arith.addf %17, %19 : vector<16x32xf32>
    %c0_13 = arith.constant 0 : index
    %c0_14 = arith.constant 0 : index
    %21 = vector.load %arg6[%c0_13, %c0_14] : memref<32x64xf32, #tpu.memory_space<vmem>>, vector<32x64xf32>
    %cst_15 = arith.constant dense<0.000000e+00> : vector<16x64xf32>
    %22 = tpu.matmul %15, %21, %cst_15 {dimension_numbers = #tpu.dot_dimension_numbers<[1], [0], [0], [1], [0, 0, 1, 1], [], []>} : vector<16x32xf32>, vector<32x64xf32>, vector<16x64xf32> -> vector<16x64xf32>
    %c0_16 = arith.constant 0 : index
    %c0_17 = arith.constant 0 : index
    %23 = vector.load %arg7[%c0_16, %c0_17] : memref<1x64xf32, #tpu.memory_space<vmem>>, vector<1x64xf32>
    %24 = vector.broadcast %23 : vector<1x64xf32> to vector<16x64xf32>
    %25 = arith.addf %22, %24 : vector<16x64xf32>
    %26 = tpu.concatenate %20, %25 in 1 : vector<16x32xf32>, vector<16x64xf32> -> vector<16x96xf32>
    %c0_18 = arith.constant 0 : index
    %c0_19 = arith.constant 0 : index
    %27 = vector.load %arg8[%c0_18, %c0_19] : memref<16x96xf32, #tpu.memory_space<vmem>>, vector<16x96xf32>
    tpu.vector_store %arg8[%c0_18, %c0_19], %26 {strides = array<i32>} : memref<16x96xf32, #tpu.memory_space<vmem>>, vector<16x96xf32>,
    return
  }
  func.func @transform_0(%arg0: i32) -> (i32, i32) {
    %c0_i32 = arith.constant 0 : i32
    %c0_i32_0 = arith.constant 0 : i32
    return %arg0, %c0_i32 : i32, i32
  }
  func.func @transform_1(%arg0: i32) -> (i32, i32) {
    %c0_i32 = arith.constant 0 : i32
    %c0_i32_0 = arith.constant 0 : i32
    %c0_i32_1 = arith.constant 0 : i32
    return %c0_i32, %c0_i32_0 : i32, i32
  }
  func.func @transform_2(%arg0: i32) -> (i32, i32) {
    %c0_i32 = arith.constant 0 : i32
    %c0_i32_0 = arith.constant 0 : i32
    %c0_i32_1 = arith.constant 0 : i32
    return %c0_i32, %c0_i32_0 : i32, i32
  }
  func.func @transform_3(%arg0: i32) -> (i32, i32) {
    %c0_i32 = arith.constant 0 : i32
    %c0_i32_0 = arith.constant 0 : i32
    %c0_i32_1 = arith.constant 0 : i32
    return %c0_i32, %c0_i32_0 : i32, i32
  }
  func.func @transform_4(%arg0: i32) -> (i32, i32) {
    %c0_i32 = arith.constant 0 : i32
    %c0_i32_0 = arith.constant 0 : i32
    %c0_i32_1 = arith.constant 0 : i32
    return %c0_i32, %c0_i32_0 : i32, i32
  }
  func.func @transform_5(%arg0: i32) -> (i32, i32) {
    %c0_i32 = arith.constant 0 : i32
    %c0_i32_0 = arith.constant 0 : i32
    %c0_i32_1 = arith.constant 0 : i32
    return %c0_i32, %c0_i32_0 : i32, i32
  }
  func.func @transform_6(%arg0: i32) -> (i32, i32) {
    %c0_i32 = arith.constant 0 : i32
    %c0_i32_0 = arith.constant 0 : i32
    %c0_i32_1 = arith.constant 0 : i32
    return %c0_i32, %c0_i32_0 : i32, i32
  }
  func.func @transform_7(%arg0: i32) -> (i32, i32) {
    %c0_i32 = arith.constant 0 : i32
    %c0_i32_0 = arith.constant 0 : i32
    return %arg0, %c0_i32 : i32, i32
  }
}

module attributes {stable_mosaic.version = 11 : i64} {
  func.func @euler_kernel(%arg0: i32, %arg1: memref<8x2x1xf32, #tpu.memory_space<vmem>>, %arg2: memref<8x2x32xf32, #tpu.memory_space<vmem>>, %arg3: memref<2x32xf32, #tpu.memory_space<vmem>>, %arg4: memref<2x64xf32, #tpu.memory_space<vmem>>, %arg5: memref<64x32xf32, #tpu.memory_space<vmem>>, %arg6: memref<32x32xf32, #tpu.memory_space<vmem>>, %arg7: memref<1x32xf32, #tpu.memory_space<vmem>>, %arg8: memref<32x32xf32, #tpu.memory_space<vmem>>, %arg9: memref<1x32xf32, #tpu.memory_space<vmem>>, %arg10: memref<8x2x32xf32, #tpu.memory_space<vmem>>, %arg11: memref<2x32xf32, #tpu.memory_space<vmem>>, %arg12: memref<2x32xf32, #tpu.memory_space<vmem>>, %arg13: memref<2x32xf32, #tpu.memory_space<vmem>>) attributes {dimension_semantics = [#tpu.dimension_semantics<arbitrary>], iteration_bounds = array<i64: 1>, scalar_prefetch = 0 : i64, scratch_operands = 3 : i64, tpu.core_type = #tpu.core_type<tc>, window_params = [{transform_indices = @transform_0, window_bounds = array<i64: 8, 2, 1>}, {transform_indices = @transform_1, window_bounds = array<i64: 8, 2, 32>}, {pipeline_mode = #tpu.pipeline_mode<synchronous>, transform_indices = @transform_2, window_bounds = array<i64: 2, 32>}, {pipeline_mode = #tpu.pipeline_mode<synchronous>, transform_indices = @transform_3, window_bounds = array<i64: 2, 64>}, {pipeline_mode = #tpu.pipeline_mode<synchronous>, transform_indices = @transform_4, window_bounds = array<i64: 64, 32>}, {pipeline_mode = #tpu.pipeline_mode<synchronous>, transform_indices = @transform_5, window_bounds = array<i64: 32, 32>}, {pipeline_mode = #tpu.pipeline_mode<synchronous>, transform_indices = @transform_6, window_bounds = array<i64: 1, 32>}, {pipeline_mode = #tpu.pipeline_mode<synchronous>, transform_indices = @transform_7, window_bounds = array<i64: 32, 32>}, {pipeline_mode = #tpu.pipeline_mode<synchronous>, transform_indices = @transform_8, window_bounds = array<i64: 1, 32>}, {transform_indices = @transform_9, window_bounds = array<i64: 8, 2, 32>}]} {
    %c0_i32 = arith.constant 0 : i32
    %0 = arith.cmpi eq, %arg0, %c0_i32 : i32
    %1 = arith.extui %0 : i1 to i32
    %c0_i32_0 = arith.constant 0 : i32
    %2 = arith.cmpi ne, %1, %c0_i32_0 : i32
    scf.if %2 {
      %c0_8 = arith.constant 0 : index
      %c0_9 = arith.constant 0 : index
      %10 = vector.load %arg4[%c0_8, %c0_9] : memref<2x64xf32, #tpu.memory_space<vmem>>, vector<2x64xf32>
      %c0_10 = arith.constant 0 : index
      %c0_11 = arith.constant 0 : index
      %11 = vector.load %arg5[%c0_10, %c0_11] : memref<64x32xf32, #tpu.memory_space<vmem>>, vector<64x32xf32>
      %cst = arith.constant dense<0.000000e+00> : vector<2x32xf32>
      %12 = tpu.matmul %10, %11, %cst {dimension_numbers = #tpu.dot_dimension_numbers<[1], [0], [0], [1], [0, 0, 1, 1], [], []>} : vector<2x64xf32>, vector<64x32xf32>, vector<2x32xf32> -> vector<2x32xf32>
      %c0_12 = arith.constant 0 : index
      %c0_13 = arith.constant 0 : index
      %13 = vector.load %arg7[%c0_12, %c0_13] : memref<1x32xf32, #tpu.memory_space<vmem>>, vector<1x32xf32>
      %14 = vector.broadcast %13 : vector<1x32xf32> to vector<2x32xf32>
      %15 = arith.addf %12, %14 : vector<2x32xf32>
      %c0_14 = arith.constant 0 : index
      %c0_15 = arith.constant 0 : index
      %16 = vector.load %arg12[%c0_14, %c0_15] : memref<2x32xf32, #tpu.memory_space<vmem>>, vector<2x32xf32>
      tpu.vector_store %arg12[%c0_14, %c0_15], %15 {strides = array<i32>} : memref<2x32xf32, #tpu.memory_space<vmem>>, vector<2x32xf32>,
      %c0_16 = arith.constant 0 : index
      %c0_17 = arith.constant 0 : index
      %17 = vector.load %arg3[%c0_16, %c0_17] : memref<2x32xf32, #tpu.memory_space<vmem>>, vector<2x32xf32>
      %c0_18 = arith.constant 0 : index
      %c0_19 = arith.constant 0 : index
      %18 = vector.load %arg11[%c0_18, %c0_19] : memref<2x32xf32, #tpu.memory_space<vmem>>, vector<2x32xf32>
      tpu.vector_store %arg11[%c0_18, %c0_19], %17 {strides = array<i32>} : memref<2x32xf32, #tpu.memory_space<vmem>>, vector<2x32xf32>,
      %cst_20 = arith.constant 0.000000e+00 : f32
      %19 = vector.broadcast %cst_20 : f32 to vector<2x32xf32>
      %c0_21 = arith.constant 0 : index
      %c0_22 = arith.constant 0 : index
      %20 = vector.load %arg13[%c0_21, %c0_22] : memref<2x32xf32, #tpu.memory_space<vmem>>, vector<2x32xf32>
      tpu.vector_store %arg13[%c0_21, %c0_22], %19 {strides = array<i32>} : memref<2x32xf32, #tpu.memory_space<vmem>>, vector<2x32xf32>,
      %c0_23 = arith.constant 0 : index
      %c0_24 = arith.constant 0 : index
      %21 = vector.load %arg3[%c0_23, %c0_24] : memref<2x32xf32, #tpu.memory_space<vmem>>, vector<2x32xf32>
      %c0_25 = arith.constant 0 : index
      %c0_26 = arith.constant 0 : index
      %c0_27 = arith.constant 0 : index
      %22 = vector.load %arg10[%c0_25, %c0_26, %c0_27] : memref<8x2x32xf32, #tpu.memory_space<vmem>>, vector<1x2x32xf32>
      %23 = vector.shape_cast %22 : vector<1x2x32xf32> to vector<2x32xf32>
      %24 = vector.shape_cast %21 : vector<2x32xf32> to vector<1x2x32xf32>
      tpu.vector_store %arg10[%c0_25, %c0_26, %c0_27], %24 {strides = array<i32>} : memref<8x2x32xf32, #tpu.memory_space<vmem>>, vector<1x2x32xf32>,
    } else {
    }
    %c0_i32_1 = arith.constant 0 : i32
    %3 = arith.cmpi ne, %arg0, %c0_i32_1 : i32
    %4 = arith.extui %3 : i1 to i32
    %c0_i32_2 = arith.constant 0 : i32
    %5 = arith.cmpi ne, %4, %c0_i32_2 : i32
    scf.if %5 {
      %c0_8 = arith.constant 0 : index
      %c0_9 = arith.constant 0 : index
      %10 = vector.load %arg13[%c0_8, %c0_9] : memref<2x32xf32, #tpu.memory_space<vmem>>, vector<2x32xf32>
      %c0_10 = arith.constant 0 : index
      %c0_11 = arith.constant 0 : index
      %c0_12 = arith.constant 0 : index
      %11 = vector.load %arg1[%c0_10, %c0_11, %c0_12] : memref<8x2x1xf32, #tpu.memory_space<vmem>>, vector<1x2x1xf32>
      %12 = vector.shape_cast %11 : vector<1x2x1xf32> to vector<2x1xf32>
      %c0_13 = arith.constant 0 : index
      %c0_14 = arith.constant 0 : index
      %13 = vector.load %arg11[%c0_13, %c0_14] : memref<2x32xf32, #tpu.memory_space<vmem>>, vector<2x32xf32>
      %c0_15 = arith.constant 0 : index
      %c0_16 = arith.constant 0 : index
      %14 = vector.load %arg12[%c0_15, %c0_16] : memref<2x32xf32, #tpu.memory_space<vmem>>, vector<2x32xf32>
      %c0_17 = arith.constant 0 : index
      %c0_18 = arith.constant 0 : index
      %15 = vector.load %arg6[%c0_17, %c0_18] : memref<32x32xf32, #tpu.memory_space<vmem>>, vector<32x32xf32>
      %cst = arith.constant dense<0.000000e+00> : vector<2x32xf32>
      %16 = tpu.matmul %13, %15, %cst {dimension_numbers = #tpu.dot_dimension_numbers<[1], [0], [0], [1], [0, 0, 1, 1], [], []>} : vector<2x32xf32>, vector<32x32xf32>, vector<2x32xf32> -> vector<2x32xf32>
      %17 = arith.addf %14, %16 : vector<2x32xf32>
      %18 = arith.addf %17, %10 : vector<2x32xf32>
      %cst_19 = arith.constant 0.000000e+00 : f32
      %19 = vector.broadcast %cst_19 : f32 to vector<2x32xf32>
      %20 = arith.cmpf ogt, %18, %19 : vector<2x32xf32>
      %cst_20 = arith.constant 0.000000e+00 : f32
      %21 = vector.broadcast %cst_20 : f32 to vector<2x32xf32>
      %22 = arith.minimumf %18, %21 : vector<2x32xf32>
      %23 = math.exp %22 : vector<2x32xf32>
      %cst_21 = arith.constant 1.000000e+00 : f32
      %24 = vector.broadcast %cst_21 : f32 to vector<2x32xf32>
      %25 = arith.subf %23, %24 : vector<2x32xf32>
      %26 = arith.select %20, %18, %25 : vector<2x32xi1>, vector<2x32xf32>
      %c0_22 = arith.constant 0 : index
      %c0_23 = arith.constant 0 : index
      %27 = vector.load %arg8[%c0_22, %c0_23] : memref<32x32xf32, #tpu.memory_space<vmem>>, vector<32x32xf32>
      %cst_24 = arith.constant dense<0.000000e+00> : vector<2x32xf32>
      %28 = tpu.matmul %26, %27, %cst_24 {dimension_numbers = #tpu.dot_dimension_numbers<[1], [0], [0], [1], [0, 0, 1, 1], [], []>} : vector<2x32xf32>, vector<32x32xf32>, vector<2x32xf32> -> vector<2x32xf32>
      %c0_25 = arith.constant 0 : index
      %c0_26 = arith.constant 0 : index
      %29 = vector.load %arg9[%c0_25, %c0_26] : memref<1x32xf32, #tpu.memory_space<vmem>>, vector<1x32xf32>
      %30 = vector.broadcast %29 : vector<1x32xf32> to vector<2x32xf32>
      %31 = arith.addf %28, %30 : vector<2x32xf32>
      %32 = vector.broadcast %12 : vector<2x1xf32> to vector<2x32xf32>
      %33 = arith.mulf %32, %31 : vector<2x32xf32>
      %34 = arith.addf %13, %33 : vector<2x32xf32>
      %c0_27 = arith.constant 0 : index
      %c0_28 = arith.constant 0 : index
      %35 = vector.load %arg11[%c0_27, %c0_28] : memref<2x32xf32, #tpu.memory_space<vmem>>, vector<2x32xf32>
      tpu.vector_store %arg11[%c0_27, %c0_28], %34 {strides = array<i32>} : memref<2x32xf32, #tpu.memory_space<vmem>>, vector<2x32xf32>,
      %c0_29 = arith.constant 0 : index
      %c0_30 = arith.constant 0 : index
      %c0_31 = arith.constant 0 : index
      %36 = vector.load %arg10[%c0_29, %c0_30, %c0_31] : memref<8x2x32xf32, #tpu.memory_space<vmem>>, vector<1x2x32xf32>
      %37 = vector.shape_cast %36 : vector<1x2x32xf32> to vector<2x32xf32>
      %38 = vector.shape_cast %34 : vector<2x32xf32> to vector<1x2x32xf32>
      tpu.vector_store %arg10[%c0_29, %c0_30, %c0_31], %38 {strides = array<i32>} : memref<8x2x32xf32, #tpu.memory_space<vmem>>, vector<1x2x32xf32>,
    } else {
    }
    %c0_i32_3 = arith.constant 0 : i32
    %c7_i32 = arith.constant 7 : i32
    %6 = arith.addi %c0_i32_3, %c7_i32 : i32
    %c1_i32 = arith.constant 1 : i32
    scf.for %arg14 = %c0_i32_3 to %6 step %c1_i32  : i32 {
      %c1_i32_8 = arith.constant 1 : i32
      %10 = arith.muli %arg14, %c1_i32_8 : i32
      %c1_i32_9 = arith.constant 1 : i32
      %11 = arith.addi %c1_i32_9, %10 : i32
      %c1_i32_10 = arith.constant 1 : i32
      %12 = arith.subi %11, %c1_i32_10 : i32
      %13 = arith.index_cast %12 : i32 to index
      %c0_11 = arith.constant 0 : index
      %c0_12 = arith.constant 0 : index
      %14 = vector.load %arg2[%13, %c0_11, %c0_12] : memref<8x2x32xf32, #tpu.memory_space<vmem>>, vector<1x2x32xf32>
      %15 = vector.shape_cast %14 : vector<1x2x32xf32> to vector<2x32xf32>
      %16 = arith.index_cast %11 : i32 to index
      %c0_13 = arith.constant 0 : index
      %c0_14 = arith.constant 0 : index
      %17 = vector.load %arg1[%16, %c0_13, %c0_14] : memref<8x2x1xf32, #tpu.memory_space<vmem>>, vector<1x2x1xf32>
      %18 = vector.shape_cast %17 : vector<1x2x1xf32> to vector<2x1xf32>
      %c0_15 = arith.constant 0 : index
      %c0_16 = arith.constant 0 : index
      %19 = vector.load %arg11[%c0_15, %c0_16] : memref<2x32xf32, #tpu.memory_space<vmem>>, vector<2x32xf32>
      %c0_17 = arith.constant 0 : index
      %c0_18 = arith.constant 0 : index
      %20 = vector.load %arg12[%c0_17, %c0_18] : memref<2x32xf32, #tpu.memory_space<vmem>>, vector<2x32xf32>
      %c0_19 = arith.constant 0 : index
      %c0_20 = arith.constant 0 : index
      %21 = vector.load %arg6[%c0_19, %c0_20] : memref<32x32xf32, #tpu.memory_space<vmem>>, vector<32x32xf32>
      %cst = arith.constant dense<0.000000e+00> : vector<2x32xf32>
      %22 = tpu.matmul %19, %21, %cst {dimension_numbers = #tpu.dot_dimension_numbers<[1], [0], [0], [1], [0, 0, 1, 1], [], []>} : vector<2x32xf32>, vector<32x32xf32>, vector<2x32xf32> -> vector<2x32xf32>
      %23 = arith.addf %20, %22 : vector<2x32xf32>
      %24 = arith.addf %23, %15 : vector<2x32xf32>
      %cst_21 = arith.constant 0.000000e+00 : f32
      %25 = vector.broadcast %cst_21 : f32 to vector<2x32xf32>
      %26 = arith.cmpf ogt, %24, %25 : vector<2x32xf32>
      %cst_22 = arith.constant 0.000000e+00 : f32
      %27 = vector.broadcast %cst_22 : f32 to vector<2x32xf32>
      %28 = arith.minimumf %24, %27 : vector<2x32xf32>
      %29 = math.exp %28 : vector<2x32xf32>
      %cst_23 = arith.constant 1.000000e+00 : f32
      %30 = vector.broadcast %cst_23 : f32 to vector<2x32xf32>
      %31 = arith.subf %29, %30 : vector<2x32xf32>
      %32 = arith.select %26, %24, %31 : vector<2x32xi1>, vector<2x32xf32>
      %c0_24 = arith.constant 0 : index
      %c0_25 = arith.constant 0 : index
      %33 = vector.load %arg8[%c0_24, %c0_25] : memref<32x32xf32, #tpu.memory_space<vmem>>, vector<32x32xf32>
      %cst_26 = arith.constant dense<0.000000e+00> : vector<2x32xf32>
      %34 = tpu.matmul %32, %33, %cst_26 {dimension_numbers = #tpu.dot_dimension_numbers<[1], [0], [0], [1], [0, 0, 1, 1], [], []>} : vector<2x32xf32>, vector<32x32xf32>, vector<2x32xf32> -> vector<2x32xf32>
      %c0_27 = arith.constant 0 : index
      %c0_28 = arith.constant 0 : index
      %35 = vector.load %arg9[%c0_27, %c0_28] : memref<1x32xf32, #tpu.memory_space<vmem>>, vector<1x32xf32>
      %36 = vector.broadcast %35 : vector<1x32xf32> to vector<2x32xf32>
      %37 = arith.addf %34, %36 : vector<2x32xf32>
      %38 = vector.broadcast %18 : vector<2x1xf32> to vector<2x32xf32>
      %39 = arith.mulf %38, %37 : vector<2x32xf32>
      %40 = arith.addf %19, %39 : vector<2x32xf32>
      %c0_29 = arith.constant 0 : index
      %c0_30 = arith.constant 0 : index
      %41 = vector.load %arg11[%c0_29, %c0_30] : memref<2x32xf32, #tpu.memory_space<vmem>>, vector<2x32xf32>
      tpu.vector_store %arg11[%c0_29, %c0_30], %40 {strides = array<i32>} : memref<2x32xf32, #tpu.memory_space<vmem>>, vector<2x32xf32>,
      %42 = arith.index_cast %11 : i32 to index
      %c0_31 = arith.constant 0 : index
      %c0_32 = arith.constant 0 : index
      %43 = vector.load %arg10[%42, %c0_31, %c0_32] : memref<8x2x32xf32, #tpu.memory_space<vmem>>, vector<1x2x32xf32>
      %44 = vector.shape_cast %43 : vector<1x2x32xf32> to vector<2x32xf32>
      %45 = vector.shape_cast %40 : vector<2x32xf32> to vector<1x2x32xf32>
      tpu.vector_store %arg10[%42, %c0_31, %c0_32], %45 {strides = array<i32>} : memref<8x2x32xf32, #tpu.memory_space<vmem>>, vector<1x2x32xf32>,
    }
    %c7_i32_4 = arith.constant 7 : i32
    %c7 = arith.constant 7 : index
    %c0 = arith.constant 0 : index
    %c0_5 = arith.constant 0 : index
    %7 = vector.load %arg2[%c7, %c0, %c0_5] : memref<8x2x32xf32, #tpu.memory_space<vmem>>, vector<1x2x32xf32>
    %8 = vector.shape_cast %7 : vector<1x2x32xf32> to vector<2x32xf32>
    %c0_6 = arith.constant 0 : index
    %c0_7 = arith.constant 0 : index
    %9 = vector.load %arg13[%c0_6, %c0_7] : memref<2x32xf32, #tpu.memory_space<vmem>>, vector<2x32xf32>
    tpu.vector_store %arg13[%c0_6, %c0_7], %8 {strides = array<i32>} : memref<2x32xf32, #tpu.memory_space<vmem>>, vector<2x32xf32>,
    return
  }
  func.func @transform_0(%arg0: i32) -> (i32, i32, i32) {
    %c0_i32 = arith.constant 0 : i32
    %c0_i32_0 = arith.constant 0 : i32
    %c0_i32_1 = arith.constant 0 : i32
    return %arg0, %c0_i32, %c0_i32_0 : i32, i32, i32
  }
  func.func @transform_1(%arg0: i32) -> (i32, i32, i32) {
    %c0_i32 = arith.constant 0 : i32
    %c0_i32_0 = arith.constant 0 : i32
    %c0_i32_1 = arith.constant 0 : i32
    return %arg0, %c0_i32, %c0_i32_0 : i32, i32, i32
  }
  func.func @transform_2(%arg0: i32) -> (i32, i32) {
    %c0_i32 = arith.constant 0 : i32
    %c0_i32_0 = arith.constant 0 : i32
    %c0_i32_1 = arith.constant 0 : i32
    return %c0_i32, %c0_i32_0 : i32, i32
  }
  func.func @transform_3(%arg0: i32) -> (i32, i32) {
    %c0_i32 = arith.constant 0 : i32
    %c0_i32_0 = arith.constant 0 : i32
    %c0_i32_1 = arith.constant 0 : i32
    return %c0_i32, %c0_i32_0 : i32, i32
  }
  func.func @transform_4(%arg0: i32) -> (i32, i32) {
    %c0_i32 = arith.constant 0 : i32
    %c0_i32_0 = arith.constant 0 : i32
    %c0_i32_1 = arith.constant 0 : i32
    return %c0_i32, %c0_i32_0 : i32, i32
  }
  func.func @transform_5(%arg0: i32) -> (i32, i32) {
    %c0_i32 = arith.constant 0 : i32
    %c0_i32_0 = arith.constant 0 : i32
    %c0_i32_1 = arith.constant 0 : i32
    return %c0_i32, %c0_i32_0 : i32, i32
  }
  func.func @transform_6(%arg0: i32) -> (i32, i32) {
    %c0_i32 = arith.constant 0 : i32
    %c0_i32_0 = arith.constant 0 : i32
    %c0_i32_1 = arith.constant 0 : i32
    return %c0_i32, %c0_i32_0 : i32, i32
  }
  func.func @transform_7(%arg0: i32) -> (i32, i32) {
    %c0_i32 = arith.constant 0 : i32
    %c0_i32_0 = arith.constant 0 : i32
    %c0_i32_1 = arith.constant 0 : i32
    return %c0_i32, %c0_i32_0 : i32, i32
  }
  func.func @transform_8(%arg0: i32) -> (i32, i32) {
    %c0_i32 = arith.constant 0 : i32
    %c0_i32_0 = arith.constant 0 : i32
    %c0_i32_1 = arith.constant 0 : i32
    return %c0_i32, %c0_i32_0 : i32, i32
  }
  func.func @transform_9(%arg0: i32) -> (i32, i32, i32) {
    %c0_i32 = arith.constant 0 : i32
    %c0_i32_0 = arith.constant 0 : i32
    %c0_i32_1 = arith.constant 0 : i32
    return %arg0, %c0_i32, %c0_i32_0 : i32, i32, i32
  }
}

</mosaic_0001>

<bundles_post_ra>
// kernel: ode_model_forward.5
= control target key start
LH: loop header
LB: loop body
LE: loop exit
PB: predicated region body
PF: predicated region fallthrough
CT: control target
= control target key end

     0   :  { %vm35_vm0 = vcmask 261120   ;;  %vm265_vm5 = vcmask 31744   ;;  %s448_s1 = inlined_call_operand.vmem [shape: f32[32,32], index: 1, kind: input, shape index: {}]   ;;  %s449_s0 = inlined_call_operand.vmem [shape: f32[32,32], index: 0, kind: input, shape index: {}]   ;;  %s450_s3 = inlined_call_operand.vmem [shape: f32[32,4], index: 3, kind: input, shape index: {}]   ;;  %s451_s2 = inlined_call_operand.vmem [shape: f32[1,32], index: 2, kind: input, shape index: {}]   ;;  %s452_s4 = inlined_call_operand.vmem [shape: f32[1,4], index: 4, kind: input, shape index: {}]   ;;  %s453_s5 = inlined_call_operand.vmem [shape: f32[32,4], index: 5, kind: output, shape index: {}]  }
   0x1   :  { %v24_v0 = vld [vmem:[%s448_s1] sm:$0xff]  ;;  %v25_v1 = vld [vmem:[%s448_s1 + $0x8] sm:$0xff]  ;;  %v26_v2 = vld [vmem:[%s448_s1 + $0x10] sm:$0xff] }
   0x2   :  { %v332_v3 = vpack.c.bf16 %v25_v1, %v24_v0  ;;  %v27_v4 = vld [vmem:[%s448_s1 + $0x18] sm:$0xff]  ;;  %v20_v5 = vld [vmem:[%s449_s0] sm:$0xff]  ;;  %v21_v7 = vld [vmem:[%s449_s0 + $0x8] sm:$0xff] }
   0x3   :  { %v336_v6 = vpack.c.bf16 %v27_v4, %v26_v2  ;;  %312 = vmatprep.mubr.msk.f32.mxu0 %vm35_vm0, %v20_v5  ;;  %v22_v8 = vld [vmem:[%s449_s0 + $0x10] sm:$0xff]  ;;  %v23_v9 = vld [vmem:[%s449_s0 + $0x18] sm:$0xff]  ;;  %v157_v10 = vld [vmem:[%s450_s3] sm:$0xff] }
   0x4   :  { %333 = vmatprep.subr.bf16.mxu0 %v332_v3  ;;  %v158_v11 = vld [vmem:[%s450_s3 + $0x8] sm:$0xff]  ;;  %v159_v12 = vld [vmem:[%s450_s3 + $0x10] sm:$0xff]  ;;  %v160_v14 = vld [vmem:[%s450_s3 + $0x18] sm:$0xff] }
   0x5   :  { %335 = vmatpush3.bf16.msra.mxu0 %v332_v3  ;;  %v340_v13 = vpack.c.bf16 %v158_v11, %v157_v10  ;;  %v344_v15 = vpack.c.bf16 %v160_v14, %v159_v12  ;;  %v274_v16 = vld [vmem:[%s451_s2] ss:$0 sm:$0xff] }
   0x6   :  { %337 = vmatprep.subr.bf16.mxu0 %v336_v6  ;;  %v283_v45 = vld [vmem:[%s452_s4] ss:$0 sm:$0xff] }
   0x7   :  { %341 = vmatprep.subr.bf16.mxu1 %v340_v13 }
   0x8   :  { %343 = vmatpush3.bf16.msra.mxu1 %v340_v13 }
   0x9   :  { %339 = vmatpush3.bf16.msra.mxu0 %v336_v6  ;;  %345 = vmatprep.subr.bf16.mxu1 %v344_v15 }
   0xc   :  { %313 = vmatmul.mubr.msk.f32.vlgmr.msra.gmra.mrb[0].mxu0 %vm35_vm0, %v21_v7  ;;  %347 = vmatpush3.bf16.msra.mxu1 %v344_v15 }
   0xd   :  { %315 = vmatprep.mubr.msk.f32.mxu0 %vm35_vm0, %v22_v8 }
  0x10   :  { %316 = vmatmul.mubr.msk.f32.gmra.mrb[2].mxu0 %vm35_vm0, %v23_v9 }
  0xdf   :  { %v314_v17 = vpop.f32.mrb[0].mxu0 }
  0xe0   :  { %v120_v18 = vadd.f32 %v314_v17, %v274_v16  ;;  %v114_v19 = vpop.f32.mrb[1].mxu0 }
  0xe1   :  { %v115_v20 = vadd.f32 %v274_v16, %v114_v19 }
  0xe2   :  { %v138_v21 = vmin.f32 %v120_v18, 0.0  ;;  %vm134_vm2 = vcmp.gt.f32.partialorder %v120_v18, 0.0 }
  0xe3   :  { %v137_v22 = vmin.f32 %v115_v20, 0.0  ;;  %v317_v23 = vpop.f32.mrb[2].mxu0  ;;  %vm133_vm1 = vcmp.gt.f32.partialorder %v115_v20, 0.0 }
  0xe4   :  { %v143_v24 = vmul.f32 1.442695, %v138_v21  ;;  %v130_v25 = vadd.f32 %v317_v23, %v274_v16  ;;  %v124_v26 = vpop.f32.mrb[3].mxu0 }
  0xe5   :  { %v141_v27 = vmul.f32 1.442695, %v137_v22  ;;  %v125_v28 = vadd.f32 %v274_v16, %v124_v26 }
  0xe6   :  { %348 = vpow2.f32 %v143_v24  ;;  %v140_v29 = vmin.f32 %v130_v25, 0.0  ;;  %vm136_vm4 = vcmp.gt.f32.partialorder %v130_v25, 0.0 }
  0xe7   :  { %350 = vpow2.f32 %v141_v27  ;;  %v139_v30 = vmin.f32 %v125_v28, 0.0  ;;  %vm135_vm3 = vcmp.gt.f32.partialorder %v125_v28, 0.0 }
  0xe8   :  { %v147_v31 = vmul.f32 1.442695, %v140_v29 }
  0xe9   :  { %v145_v32 = vmul.f32 1.442695, %v139_v30 }
  0xea   :  { %352 = vpow2.f32 %v147_v31 }
  0xeb   :  { %354 = vpow2.f32 %v145_v32 }
  0xf0   :  { %v349_v33 = vpop.eup %348 }
  0xf1   :  { %v351_v34 = vpop.eup %350  ;;  %v280_v35 = vadd.f32 -1.0, %v349_v33 }
  0xf2   :  { %v279_v36 = vadd.f32 -1.0, %v351_v34 }
  0xf3   :  { %v154_v40 = vsel %vm134_vm2, %v120_v18, %v280_v35 }
  0xf4   :  { %v353_v37 = vpop.eup %352  ;;  %v153_v38 = vsel %vm133_vm1, %v115_v20, %v279_v36 }
  0xf5   :  { %v355_v39 = vpop.eup %354  ;;  %326 = vmatprep.mubr.msk.f32.mxu1 %vm35_vm0, %v153_v38  ;;  %v282_v41 = vadd.f32 -1.0, %v353_v37 }
  0xf6   :  { %327 = vmatmul.mubr.msk.f32.vlgmr.msra.gmra.mrb[0].mxu1 %vm35_vm0, %v154_v40  ;;  %v281_v42 = vadd.f32 -1.0, %v355_v39 }
  0xf7   :  { %v156_v44 = vsel %vm136_vm4, %v130_v25, %v282_v41 }
  0xf8   :  { %v155_v43 = vsel %vm135_vm3, %v125_v28, %v281_v42 }
  0xf9   :  { %329 = vmatprep.mubr.msk.f32.mxu1 %vm35_vm0, %v155_v43 }
  0xfa   :  { %330 = vmatmul.mubr.msk.f32.gmra.mrb[2].mxu1 %vm35_vm0, %v156_v44 }
 0x1c9   :  { %v328_v46 = vpop.f32.mrb[0].mxu1 }
 0x1ca   :  { %v252_v47 = vadd.f32 %v328_v46, %v283_v45  ;;  %v246_v48 = vpop.f32.mrb[1].mxu1 }
 0x1cb   :  { %v247_v49 = vadd.f32 %v283_v45, %v246_v48 }
 0x1cc   :  { %267 = vst.msk [vmem:[%s453_s5 + $0x8] sm:$0xff] %vm265_vm5, %v252_v47 }
 0x1cd   :  { %266 = vst.msk [vmem:[%s453_s5] sm:$0xff] %vm265_vm5, %v247_v49  ;;  %v331_v50 = vpop.f32.mrb[2].mxu1 }
 0x1ce   :  { %v262_v51 = vadd.f32 %v331_v50, %v283_v45  ;;  %v256_v52 = vpop.f32.mrb[3].mxu1 }
 0x1cf   :  { %v257_v53 = vadd.f32 %v283_v45, %v256_v52 }
 0x1d0   :  { %269 = vst.msk [vmem:[%s453_s5 + $0x18] sm:$0xff] %vm265_vm5, %v262_v51 }
 0x1d1   :  { %268 = vst.msk [vmem:[%s453_s5 + $0x10] sm:$0xff] %vm265_vm5, %v257_v53 }

// kernel: ode_model_forward.3
= control target key start
LH: loop header
LB: loop body
LE: loop exit
PB: predicated region body
PF: predicated region fallthrough
CT: control target
= control target key end

     0   :  { %vm43_vm0 = vcmask 1046528   ;;  %vm36_vm1 = vcmask 56320   ;;  %vm145_vm2 = vcmask 261120   ;;  %s415_s23 = smov 32   ;;  %vm331_vm5 = vcmask 785408   ;;  %s510_s1 = inlined_call_operand.vmem [shape: f32[7,64], index: 1, kind: input, shape index: {}]   ;;  %s511_s0 = inlined_call_operand.vmem [shape: f32[16,7], index: 0, kind: input, shape index: {}]   ;;  %s512_s3 = inlined_call_operand.vmem [shape: f32[32,32], index: 3, kind: input, shape index: {}]   ;;  %s513_s5 = inlined_call_operand.vmem [shape: f32[32,64], index: 5, kind: input, shape index: {}]   ;;  %s514_s2 = inlined_call_operand.vmem [shape: f32[1,64], index: 2, kind: input, shape index: {}]   ;;  %s515_s6 = inlined_call_operand.vmem [shape: f32[1,64], index: 6, kind: input, shape index: {}]   ;;  %s516_s4 = inlined_call_operand.vmem [shape: f32[1,32], index: 4, kind: input, shape index: {}]   ;;  %s517_s7 = inlined_call_operand.vmem [shape: f32[16,96], index: 7, kind: output, shape index: {}]  }
   0x1   :  { %v28_v0 = vld [vmem:[%s510_s1] sm:$0x7f]  ;;  %v27_v2 = vld [vmem:[%s511_s0 + $0x8] sm:$0xff]  ;;  %v136_v5 = vld [vmem:[%s512_s3 + $0x10] sm:$0xff] }
   0x2   :  { %v26_v1 = vld [vmem:[%s511_s0] sm:$0xff]  ;;  %365 = vmatprep.subr.msk.mxu0 %vm43_vm0, %v28_v0  ;;  %v135_v4 = vld [vmem:[%s512_s3 + $0x8] sm:$0xff]  ;;  %v137_v7 = vld [vmem:[%s512_s3 + $0x18] sm:$0xff] }
   0x3   :  { %367 = vmatprep.mubr.msk.f32.mxu0 %vm36_vm1, %v26_v1  ;;  %366 = vmatpush3.msk.msra.mxu0 %vm43_vm0, %v28_v0  ;;  %v134_v3 = vld [vmem:[%s512_s3] sm:$0xff]  ;;  %v396_v8 = vpack.c.bf16 %v137_v7, %v136_v5  ;;  %v228_v10 = vld [vmem:[%s513_s5 + $0x8] sm:$0xff]  ;;  %v229_v21 = vld [vmem:[%s513_s5 + $0x10] sm:$0xff] }
   0x4   :  { %368 = vmatmul.mubr.msk.f32.vlgmr.msra.gmra.mrb[0].mxu0 %vm36_vm1, %v27_v2  ;;  %v392_v6 = vpack.c.bf16 %v135_v4, %v134_v3  ;;  %v227_v9 = vld [vmem:[%s513_s5] sm:$0xff]  ;;  %v230_v22 = vld [vmem:[%s513_s5 + $0x18] sm:$0xff] }
   0x5   :  { %v400_v11 = vpack.c.bf16 %v228_v10, %v227_v9  ;;  %v338_v12 = vld [vmem:[%s514_s2] ss:$0 sm:$0xff]  ;;  %v404_v23 = vpack.c.bf16 %v230_v22, %v229_v21  ;;  %s414_s2 = smov 96  }
   0x6   :  { %393 = vmatprep.subr.bf16.mxu1 %v392_v6  ;;  %v347_v34 = vld [vmem:[%s515_s6] ss:$0 sm:$0xff] }
   0x7   :  { %395 = vmatpush3.bf16.msra.mxu1 %v392_v6  ;;  %401 = vmatprep.subr.bf16.mxu0 %v400_v11  ;;  %v344_v39 = vld [vmem:[%s516_s4] ss:$0 sm:$0xff] }
   0x8   :  { %397 = vmatprep.subr.bf16.mxu1 %v396_v8  ;;  %403 = vmatpush3.bf16.msra.mxu0 %v400_v11 }
   0x9   :  { %405 = vmatprep.subr.bf16.mxu0 %v404_v23 }
   0xb   :  { %399 = vmatpush3.bf16.msra.mxu1 %v396_v8 }
   0xc   :  { %407 = vmatpush3.bf16.msra.mxu0 %v404_v23 }
  0xd7   :  { %v369_v13 = vpop.f32.mrb[0].mxu0 }
  0xd8   :  { %v119_v14 = vadd.f32 %v369_v13, %v338_v12  ;;  %v113_v15 = vpop.f32.mrb[1].mxu0 }
  0xd9   :  { %v114_v16 = vadd.f32 %v338_v12, %v113_v15 }
  0xda   :  { %v125_v17 = vmin.f32 %v119_v14, 0.0  ;;  %vm123_vm4 = vcmp.gt.f32.partialorder %v119_v14, 0.0 }
  0xdb   :  { %v124_v18 = vmin.f32 %v114_v16, 0.0  ;;  %vm122_vm3 = vcmp.gt.f32.partialorder %v114_v16, 0.0 }
  0xdc   :  { %v128_v19 = vmul.f32 1.442695, %v125_v17 }
  0xdd   :  { %v126_v20 = vmul.f32 1.442695, %v124_v18 }
  0xde   :  { %410 = vpow2.f32 %v128_v19 }
  0xdf   :  { %412 = vpow2.f32 %v126_v20 }
  0xe8   :  { %v411_v24 = vpop.eup %410 }
  0xe9   :  { %v413_v25 = vpop.eup %412  ;;  %v343_v26 = vadd.f32 -1.0, %v411_v24 }
  0xea   :  { %v342_v27 = vadd.f32 -1.0, %v413_v25 }
  0xeb   :  { %v133_v29 = vsel %vm123_vm4, %v119_v14, %v343_v26 }
  0xec   :  { %v132_v28 = vsel %vm122_vm3, %v114_v16, %v342_v27 }
  0xed   :  { %238 = vrot.lane.b32.xlu0 %v132_v28, %s414_s2  ;;  %378 = vmatprep.mubr.msk.f32.mxu1 %vm145_vm2, %v132_v28 }
  0xee   :  { %379 = vmatmul.mubr.msk.f32.vlgmr.msra.gmra.mrb[0].mxu1 %vm145_vm2, %v133_v29 }
  0xf1   :  { %240 = vrot.lane.b32.xlu0 %v133_v29, %s414_s2 }
 0x15f   :  { %v239_v30 = vpop.permute.xlu0 %238 }
 0x160   :  { %389 = vmatprep.mubr.msk.f32.mxu0 %vm145_vm2, %v239_v30 }
 0x163   :  { %v241_v31 = vpop.permute.xlu0 %240 }
 0x164   :  { %390 = vmatmul.mubr.msk.f32.vlgmr.msra.gmra.mrb[2].mxu0 %vm145_vm2, %v241_v31 }
 0x1c1   :  { %v380_v32 = vpop.f32.mrb[0].mxu1 }
 0x1c2   :  { %v218_v33 = vpop.f32.mrb[1].mxu1  ;;  %v224_v43 = vadd.f32 %v380_v32, %v344_v39 }
 0x1c3   :  { %v219_v40 = vadd.f32 %v344_v39, %v218_v33 }
 0x237   :  { %v391_v35 = vpop.f32.mrb[2].mxu0 }
 0x238   :  { %v312_v36 = vpop.f32.mrb[3].mxu0  ;;  %v318_v38 = vadd.f32 %v391_v35, %v347_v34 }
 0x239   :  { %v313_v37 = vadd.f32 %v347_v34, %v312_v36 }
 0x23b   :  { %323 = vrot.lane.b32.xlu1 %v313_v37, %s415_s23 }
 0x23f   :  { %325 = vrot.lane.b32.xlu1 %v318_v38, %s415_s23 }
 0x2ad   :  { %v324_v41 = vpop.permute.xlu1 %323 }
 0x2ae   :  { %v329_v42 = vsel %vm145_vm2, %v219_v40, %v324_v41 }
 0x2af   :  { %332 = vst.msk [vmem:[%s517_s7] sm:$0xff] %vm331_vm5, %v329_v42 }
 0x2b1   :  { %v326_v44 = vpop.permute.xlu1 %325 }
 0x2b2   :  { %v330_v45 = vsel %vm145_vm2, %v224_v43, %v326_v44 }
 0x2b3   :  { %333 = vst.msk [vmem:[%s517_s7 + $0x8] sm:$0xff] %vm331_vm5, %v330_v45 }

// kernel: ode_model_forward.4
= control target key start
LH: loop header
LB: loop body
LE: loop exit
PB: predicated region body
PF: predicated region fallthrough
CT: control target
= control target key end

     0   :  { %vm126_vm0 = vcmask 254976   ;;  %v664_v0 = vmov 0.0|0.0   ;;  %vm665_vm1 = vmmov 0   ;;  %v666_v4 = vmov 0.0   ;;  %s817_s0 = inlined_call_operand.vmem [shape: f32[8,2,1], index: 0, kind: input, shape index: {}]   ;;  %s818_s1 = inlined_call_operand.vmem [shape: f32[8,2,32], index: 1, kind: input, shape index: {}]   ;;  %s819_s5 = inlined_call_operand.vmem [shape: f32[32,32], index: 5, kind: input, shape index: {}]   ;;  %s820_s7 = inlined_call_operand.vmem [shape: f32[32,32], index: 7, kind: input, shape index: {}]   ;;  %s821_s8 = inlined_call_operand.vmem [shape: f32[1,32], index: 8, kind: input, shape index: {}]   ;;  %s822_s4 = inlined_call_operand.vmem [shape: f32[64,32], index: 4, kind: input, shape index: {}]   ;;  %s823_s2 = inlined_call_operand.vmem [shape: f32[2,32], index: 2, kind: input, shape index: {}]   ;;  %s824_s9 = inlined_call_operand.vmem [shape: f32[8,2,32], index: 9, kind: output, shape index: {}]   ;;  %s825_s3 = inlined_call_operand.vmem [shape: f32[2,64], index: 3, kind: input, shape index: {}]   ;;  %s826_s6 = inlined_call_operand.vmem [shape: f32[1,32], index: 6, kind: input, shape index: {}]  }
   0x1   :  { %614 = vmatprep.subr.bf16.mxu0 %v664_v0  ;;  %v37_v1 = vld [vmem:[%s822_s4] sm:$0xff]  ;;  %v38_v2 = vld [vmem:[%s822_s4 + $0x8] sm:$0xff]  ;;  %v39_v3 = vld [vmem:[%s822_s4 + $0x10] sm:$0xff]  ;;  %589 = vmatprep.mubr.msk.f32.mxu0 %vm665_vm1, %v666_v4  ;;  %vm52_vm2 = vcmask 523264  }
   0x2   :  { %v615_v5 = vpack.c.bf16 %v38_v2, %v37_v1  ;;  %v40_v6 = vld [vmem:[%s822_s4 + $0x18] sm:$0xff]  ;;  %v128_v7 = vld [vmem:[%s823_s2] sm:$0x3]  ;;  %v42_v11 = vld [vmem:[%s822_s4 + $0x28] sm:$0xff] }
   0x3   :  { %v618_v8 = vpack.c.bf16 %v40_v6, %v39_v3  ;;  %129 = vst.msk [vmem:[#allocation2] sm:$0x3] %vm126_vm0, %v128_v7  ;;  %v131_v9 = vld [vmem:[%s823_s2] sm:$0x3]  ;;  %v43_v13 = vld [vmem:[%s822_s4 + $0x30] sm:$0xff]  ;;  %v44_v14 = vld [vmem:[%s822_s4 + $0x38] sm:$0xff] }
   0x4   :  { %616 = vmatpush3.bf16.msra.mxu0 %v615_v5  ;;  %v41_v10 = vld [vmem:[%s822_s4 + $0x20] sm:$0xff]  ;;  %132 = vst.msk [vmem:[%s824_s9] sm:$0x3] %vm126_vm0, %v131_v9  ;;  %v624_v15 = vpack.c.bf16 %v44_v14, %v43_v13  ;;  %s763_s4 = smov 0  }
   0x5   :  { %617 = vmatprep.subr.bf16.mxu0 %v664_v0  ;;  %v621_v12 = vpack.c.bf16 %v42_v11, %v41_v10  ;;  %v36_v16 = vld [vmem:[%s825_s3] sm:$0x3] }
   0x6   :  { %v538_v17 = vld [vmem:[%s826_s6] ss:$0 sm:$0xff] }
   0x8   :  { %619 = vmatpush3.bf16.msra.mxu0 %v618_v8 }
   0x9   :  { %620 = vmatprep.subr.bf16.mxu0 %v664_v0 }
   0xc   :  { %622 = vmatpush3.bf16.msra.mxu0 %v621_v12 }
   0xd   :  { %623 = vmatprep.subr.bf16.mxu0 %v664_v0 }
  0x10   :  { %625 = vmatpush3.bf16.msra.mxu0 %v624_v15 }
  0x13   :  { %590 = vmatmul.mubr.msk.f32.vlgmr.msra.gmra.mrb[0].mxu0 %vm52_vm2, %v36_v16 }
  0xe6   :  { %v122_v18 = vpop.f32.mrb[0].mxu0 }
  0xe7   :  { %v123_v19 = vadd.f32 %v538_v17, %v122_v18  ;;  %v591_v20 = vpop.f32.mrb[1].mxu0 }
  0xe9   :  { %127 = vst.msk [vmem:[#allocation3] sm:$0x3] %vm126_vm0, %v123_v19 }
  0xea LB: > { %v336_v21 = vld [vmem:[%s819_s5] sm:$0xff]  ;;  %v337_v22 = vld [vmem:[%s819_s5 + $0x8] sm:$0xff]  ;;  %v338_v23 = vld [vmem:[%s819_s5 + $0x10] sm:$0xff]  ;;  %v667_v24 = vmov 0.0|0.0   ;;  %vm668_vm3 = vmmov 0   ;;  %v669_v27 = vmov 0.0   ;;  %s662_s4 = sphi %s763_s4, %s326_s4  }
  0xeb   : > { %626 = vmatprep.subr.bf16.mxu0 %v667_v24  ;;  %v627_v25 = vpack.c.bf16 %v337_v22, %v336_v21  ;;  %v339_v26 = vld [vmem:[%s819_s5 + $0x18] sm:$0xff]  ;;  %600 = vmatprep.mubr.msk.f32.mxu0 %vm668_vm3, %v669_v27  ;;  %v334_v29 = vld [vmem:[#allocation2] sm:$0x3]  ;;  %vm340_vm4 = vcmask 261120   ;;  %v423_v31 = vld [vmem:[%s820_s7 + $0x8] sm:$0xff]  ;;  %s794_s27 = sshll.u32 %s662_s4, 1 }
  0xec   : > { %632 = vmatprep.subr.bf16.mxu1 %v667_v24  ;;  %611 = vmatprep.mubr.msk.f32.mxu1 %vm668_vm3, %v669_v27  ;;  %v630_v28 = vpack.c.bf16 %v339_v26, %v338_v23  ;;  %v422_v30 = vld [vmem:[%s820_s7] sm:$0xff]  ;;  %v424_v32 = vld [vmem:[%s820_s7 + $0x10] sm:$0xff]  ;;  %v425_v34 = vld [vmem:[%s820_s7 + $0x18] sm:$0xff]  ;;  %s528_s29 = scalar_lea.vmem %s817_s0, %s794_s27  ;;  %v670_v36 = vmov 0   ;;  %s329_s11 = scalar_lea.vmem %s818_s1, %s794_s27 }
  0xed   : > { %628 = vmatpush3.bf16.msra.mxu0 %v627_v25  ;;  %v633_v33 = vpack.c.bf16 %v423_v31, %v422_v30  ;;  %v636_v35 = vpack.c.bf16 %v425_v34, %v424_v32  ;;  %653 = vset.pattern.permute.xlu0 %v670_v36  ;;  %v546_v37 = vld [vmem:[%s528_s29 + $0x2] sm:$0x3]  ;;  %v330_v39 = vld [vmem:[%s329_s11] sm:$0x3]  ;;  %s531_s15 = scalar_lea.vmem %s824_s9, %s794_s27  ;;  %s326_s4 = sadd.s32 1, %s662_s4  }
  0xee   : > { %629 = vmatprep.subr.bf16.mxu0 %v667_v24  ;;  %508 = vperm.xlu0 %653, %v546_v37   ;;  %v549_v49 = vld [vmem:[%s821_s8] ss:$0 sm:$0xff]  ;;  %p323_p0 = scmp.ge.s32.totalorder %s326_s4, 7  }
  0xef   : > { %634 = vmatpush3.bf16.msra.mxu1 %v633_v33 }
  0xf0   : > { %635 = vmatprep.subr.bf16.mxu1 %v667_v24  ;;  %v335_v38 = vld [vmem:[#allocation3] sm:$0x3] }
  0xf1   : > { %631 = vmatpush3.bf16.msra.mxu0 %v630_v28 }
  0xf3   : > { %637 = vmatpush3.bf16.msra.mxu1 %v636_v35 }
  0xf4   : > { %601 = vmatmul.mubr.msk.f32.vlgmr.msra.gmra.mrb[0].mxu0 %vm340_vm4, %v334_v29 }
 0x16d   : > { %v509_v51 = vpop.permute.xlu0 %508 }
 0x1c7   : > { %v410_v40 = vpop.f32.mrb[0].mxu0 }
 0x1c8   : > { %v414_v41 = vadd.f32 %v410_v40, %v335_v38  ;;  %v602_v42 = vpop.f32.mrb[1].mxu0 }
 0x1ca   : > { %v415_v43 = vadd.f32 %v414_v41, %v330_v39 }
 0x1cc   : > { %v417_v44 = vmin.f32 %v415_v43, 0.0  ;;  %vm416_vm5 = vcmp.gt.f32.partialorder %v415_v43, 0.0 }
 0x1ce   : > { %v418_v45 = vmul.f32 1.442695, %v417_v44 }
 0x1d0   : > { %654 = vpow2.f32 %v418_v45 }
 0x1da   : > { %v655_v46 = vpop.eup %654 }
 0x1db   : > { %v548_v47 = vadd.f32 -1.0, %v655_v46 }
 0x1dd   : > { %v421_v48 = vsel %vm416_vm5, %v415_v43, %v548_v47 }
 0x1de   : > { %612 = vmatmul.mubr.msk.f32.vlgmr.msra.gmra.mrb[0].mxu1 %vm340_vm4, %v421_v48 }
 0x2b1   : > { %v502_v50 = vpop.f32.mrb[0].mxu1 }
 0x2b2   : > { %v503_v52 = vadd.f32 %v549_v49, %v502_v50  ;;  %v613_v53 = vpop.f32.mrb[1].mxu1  ;;  %325 = sbr.rel (!%p323_p0) target bundleno = 234 (0xea), region = 75 }
 0x2b4   : > { %v511_v54 = vmul.f32 %v509_v51, %v503_v52 }
 0x2b6   : > { %v512_v55 = vadd.f32 %v511_v54, %v334_v29 }
 0x2b8   : > { %514 = vst.msk [vmem:[#allocation2] sm:$0x3] %vm126_vm0, %v512_v55  ;;  %552 = vst.msk [vmem:[%s531_s15 + $0x2] sm:$0x3] %vm126_vm0, %v512_v55 }

</bundles_post_ra>
